<compile_context>
chip_gen: v7x
topology: tpu7x:2x2x1
jax: 0.10.0
libtpu: 0.0.40
codegen_flags: <defaults>
</compile_context>

<pallas_src>
import functools

import jax
import jax.numpy as jnp
import numpy as np
from jax.experimental import pallas as pl
from jax.experimental.pallas import tpu as pltpu

ALPHA = 0.5
LANES = 128
SUBLANES = 8


def _round_up(x, m):
    return ((x + m - 1) // m) * m


def _default_num_splits():
    # 2 TensorCores only on v7x; on single-TC chips (v5e/v6e) a second split
    # buys nothing and just adds a (possibly duplicated) tile of HBM traffic.
    try:
        kind = jax.devices()[0].device_kind.lower()
    except Exception:  # pragma: no cover - defensive
        return 1
    return 2 if ("v7" in kind or "7x" in kind) else 1


def _combined_loss_kernel(yp_ref, yt_ref, out_ref, acc_sq, acc_ab, *,
                          tiles_per_split, tile_rows, rows_valid, mask_tail,
                          alpha, scale):
    c = pl.program_id(0)
    i = pl.program_id(1)

    @pl.when(i == 0)
    def _init():
        acc_sq[...] = jnp.zeros_like(acc_sq)
        acc_ab[...] = jnp.zeros_like(acc_ab)

    # Cast per tile -> f32 accumulation regardless of input dtype.
    diff = yp_ref[...].astype(jnp.float32) - yt_ref[...].astype(jnp.float32)

    if mask_tail:
        # Zero contributions from rows past the end of the real data:
        # ragged last tile and any duplicated (clamped) tile of an uneven
        # split.  Pure VPU iota + compare + select.
        tile = c * tiles_per_split + i
        row0 = tile * tile_rows
        rows = row0 + jax.lax.broadcasted_iota(jnp.int32, diff.shape, 0)
        diff = jnp.where(rows < rows_valid, diff, 0.0)

    # Collapse (tile_rows, 128) -> (8, 128): the axis-0 reduce is across
    # different vregs, so it is plain VALU adds into a vreg-resident partial.
    sq = (diff * diff).reshape(-1, SUBLANES, LANES)
    ab = jnp.abs(diff).reshape(-1, SUBLANES, LANES)
    acc_sq[...] += jnp.sum(sq, axis=0)
    acc_ab[...] += jnp.sum(ab, axis=0)

    @pl.when(i == pl.num_programs(1) - 1)
    def _finalize():
        # alpha combine + (w_mean / N) scaling folded into one (8,128) write.
        combined = alpha * acc_sq[...] + (1.0 - alpha) * acc_ab[...]
        out_ref[...] = (combined * scale)[None]


@functools.partial(jax.jit,
                   static_argnames=("alpha", "tile_rows", "num_splits"))
def combined_loss(y_pred, y_true, *, alpha=ALPHA, tile_rows=8192,
                  num_splits=None):
    assert y_pred.shape == y_true.shape
    seq_len = y_pred.shape[1]
    n = int(np.prod(y_pred.shape))

    if num_splits is None:
        num_splits = _default_num_splits()

    # Lane-dense layout: flat -> (rows, 128).  When numel is a multiple of
    # 128 this is a pure layout-preserving reshape (no HBM copy); otherwise
    # we pad the flat tail to the next multiple of 128 (zeros contribute
    # nothing to either sum).
    rows_valid = pl.cdiv(n, LANES)
    pad = rows_valid * LANES - n
    yp_flat = jnp.ravel(y_pred)
    yt_flat = jnp.ravel(y_true)
    if pad:
        # TODO(synk): non-128-divisible sizes still materialize one padded
        # copy; a split "bulk + tail" dispatch would avoid it.
        yp_flat = jnp.pad(yp_flat, (0, pad))
        yt_flat = jnp.pad(yt_flat, (0, pad))
    yp2 = yp_flat.reshape(rows_valid, LANES)
    yt2 = yt_flat.reshape(rows_valid, LANES)

    # Tile sizing: multiple of 8 sublanes, no bigger than needed.
    tile_rows = min(tile_rows, _round_up(rows_valid, SUBLANES))
    tile_rows = max(SUBLANES, _round_up(tile_rows, SUBLANES))

    tiles_actual = pl.cdiv(rows_valid, tile_rows)
    num_splits = max(1, min(num_splits, tiles_actual))
    tiles_per_split = pl.cdiv(tiles_actual, num_splits)

    # Ragged handling is done in-kernel; any tile whose logical index exceeds
    # the real tile count is clamped to a valid block (no OOB DMA) and its
    # contribution is masked to zero.
    mask_tail = (rows_valid % tile_rows != 0) or \
                (num_splits * tiles_per_split != tiles_actual)

    def in_index_map(c, i):
        tile = c * tiles_per_split + i
        tile = jnp.minimum(tile, tiles_actual - 1)
        return (tile, 0)

    in_spec = pl.BlockSpec((tile_rows, LANES), in_index_map)
    out_spec = pl.BlockSpec((1, SUBLANES, LANES), lambda c, i: (c, 0, 0))

    # Static scalars hoisted out of the hot loop: time-weight mean and 1/N
    # (seq_len / n are static, so these are trace-time constants).
    w_mean = float(np.mean(np.exp(-np.arange(seq_len) * 0.1)))
    scale = w_mean / float(n)

    kernel = functools.partial(
        _combined_loss_kernel,
        tiles_per_split=tiles_per_split,
        tile_rows=tile_rows,
        rows_valid=rows_valid,
        mask_tail=mask_tail,
        alpha=float(alpha),
        scale=scale,
    )

    # VMEM budget at tile_rows=8192 f32: 2 inputs x 2 buffers x 4 MiB = 16 MiB
    # + two (8,128) f32 accumulators (~8 KiB) -> well under the 32 MiB scoped
    # default on v5e/v6e/v7x.
    partial_out = pl.pallas_call(
        kernel,
        grid=(num_splits, tiles_per_split),
        in_specs=[in_spec, in_spec],
        out_specs=out_spec,
        out_shape=jax.ShapeDtypeStruct((num_splits, SUBLANES, LANES),
                                       jnp.float32),
        scratch_shapes=[
            pltpu.VMEM((SUBLANES, LANES), jnp.float32),
            pltpu.VMEM((SUBLANES, LANES), jnp.float32),
        ],
        compiler_params=pltpu.CompilerParams(
            dimension_semantics=("parallel", "arbitrary"),
            vmem_limit_bytes=32 * 1024 * 1024,
        ),
    )(yp2, yt2)

    # Everything (alpha, 1/N, time-weight mean) already folded in-kernel.
    return jnp.sum(partial_out)


def combined_loss_ref(y_pred, y_true, alpha=ALPHA):
    """Pure-JAX reference mirroring the PyTorch forward exactly."""
    yp = y_pred.astype(jnp.float32)
    yt = y_true.astype(jnp.float32)
    mse = jnp.mean((yp - yt) ** 2)
    mae = jnp.mean(jnp.abs(yp - yt))
    seq_len = yp.shape[1]
    tw = jnp.exp(-jnp.arange(seq_len, dtype=jnp.float32) * 0.1)
    tw = jnp.broadcast_to(tw.reshape(1, -1, 1), yp.shape)
    combined = alpha * mse + (1.0 - alpha) * mae
    return jnp.mean(combined * tw)


if __name__ == "__main__":
    B, S, D = 2, 8, 32  # batch, seq_len, features
    key = jax.random.PRNGKey(0)
    k1, k2 = jax.random.split(key)
    y_pred = jax.random.normal(k1, (B, S, D), dtype=jnp.float32)
    y_true = jax.random.normal(k2, (B, S, D), dtype=jnp.float32)

    loss = jax.block_until_ready(combined_loss(y_pred, y_true))
    ref = jax.block_until_ready(combined_loss_ref(y_pred, y_true))
    assert jnp.allclose(loss, ref, rtol=1e-5, atol=1e-6), (loss, ref)

    # Exercise the in-kernel ragged-tail mask path (numel % 128 != 0 -> pad
    # branch, rows not a multiple of tile_rows).
    k3, k4 = jax.random.split(k2)
    y_pred2 = jax.random.normal(k3, (2, 5, 13), dtype=jnp.float32)
    y_true2 = jax.random.normal(k4, (2, 5, 13), dtype=jnp.float32)
    loss2 = jax.block_until_ready(combined_loss(y_pred2, y_true2))
    ref2 = jax.block_until_ready(combined_loss_ref(y_pred2, y_true2))
    assert jnp.allclose(loss2, ref2, rtol=1e-5, atol=1e-6), (loss2, ref2)

    print("KERNEL_OK")
</pallas_src>

<mosaic_0001>
module attributes {stable_mosaic.version = 11 : i64} {
  func.func @_combined_loss_kernel(%arg0: i32, %arg1: i32, %arg2: memref<8x128xf32, #tpu.memory_space<vmem>>, %arg3: memref<8x128xf32, #tpu.memory_space<vmem>>, %arg4: memref<1x8x128xf32, #tpu.memory_space<vmem>>, %arg5: memref<8x128xf32, #tpu.memory_space<vmem>>, %arg6: memref<8x128xf32, #tpu.memory_space<vmem>>) attributes {dimension_semantics = [#tpu.dimension_semantics<parallel>, #tpu.dimension_semantics<arbitrary>], iteration_bounds = array<i64: 1, 1>, scalar_prefetch = 0 : i64, scratch_operands = 2 : i64, tpu.core_type = #tpu.core_type<tc>, window_params = [{transform_indices = @transform_0, window_bounds = array<i64: 8, 128>}, {transform_indices = @transform_1, window_bounds = array<i64: 8, 128>}, {transform_indices = @transform_2, window_bounds = array<i64: 1, 8, 128>}]} {
    %c0_i32 = arith.constant 0 : i32
    %0 = arith.cmpi eq, %arg1, %c0_i32 : i32
    %1 = arith.extui %0 : i1 to i32
    %c0_i32_0 = arith.constant 0 : i32
    %2 = arith.cmpi ne, %1, %c0_i32_0 : i32
    scf.if %2 {
      %cst_16 = arith.constant 0.000000e+00 : f32
      %31 = vector.broadcast %cst_16 : f32 to vector<8x128xf32>
      %c0_17 = arith.constant 0 : index
      %c0_18 = arith.constant 0 : index
      %32 = vector.load %arg5[%c0_17, %c0_18] : memref<8x128xf32, #tpu.memory_space<vmem>>, vector<8x128xf32>
      tpu.vector_store %arg5[%c0_17, %c0_18], %31 {strides = array<i32>} : memref<8x128xf32, #tpu.memory_space<vmem>>, vector<8x128xf32>,
      %cst_19 = arith.constant 0.000000e+00 : f32
      %33 = vector.broadcast %cst_19 : f32 to vector<8x128xf32>
      %c0_20 = arith.constant 0 : index
      %c0_21 = arith.constant 0 : index
      %34 = vector.load %arg6[%c0_20, %c0_21] : memref<8x128xf32, #tpu.memory_space<vmem>>, vector<8x128xf32>
      tpu.vector_store %arg6[%c0_20, %c0_21], %33 {strides = array<i32>} : memref<8x128xf32, #tpu.memory_space<vmem>>, vector<8x128xf32>,
    } else {
    }
    %c0 = arith.constant 0 : index
    %c0_1 = arith.constant 0 : index
    %3 = vector.load %arg2[%c0, %c0_1] : memref<8x128xf32, #tpu.memory_space<vmem>>, vector<8x128xf32>
    %c0_2 = arith.constant 0 : index
    %c0_3 = arith.constant 0 : index
    %4 = vector.load %arg3[%c0_2, %c0_3] : memref<8x128xf32, #tpu.memory_space<vmem>>, vector<8x128xf32>
    %5 = arith.subf %3, %4 : vector<8x128xf32>
    %c1_i32 = arith.constant 1 : i32
    %6 = arith.muli %arg0, %c1_i32 : i32
    %7 = arith.addi %6, %arg1 : i32
    %c8_i32 = arith.constant 8 : i32
    %8 = arith.muli %7, %c8_i32 : i32
    %9 = tpu.iota {dimensions = array<i32: 0>} : vector<8x128xi32>
    %10 = vector.broadcast %8 : i32 to vector<8x128xi32>
    %11 = arith.addi %10, %9 : vector<8x128xi32>
    %c4_i32 = arith.constant 4 : i32
    %12 = vector.broadcast %c4_i32 : i32 to vector<8x128xi32>
    %13 = arith.cmpi slt, %11, %12 : vector<8x128xi32>
    %cst = arith.constant 0.000000e+00 : f32
    %14 = vector.broadcast %cst : f32 to vector<8x128xf32>
    %15 = arith.select %13, %5, %14 : vector<8x128xi1>, vector<8x128xf32>
    %16 = arith.mulf %15, %15 : vector<8x128xf32>
    %17 = vector.shape_cast %16 : vector<8x128xf32> to vector<1x8x128xf32>
    %18 = math.absf %15 : vector<8x128xf32>
    %19 = vector.shape_cast %18 : vector<8x128xf32> to vector<1x8x128xf32>
    %c0_4 = arith.constant 0 : index
    %c0_5 = arith.constant 0 : index
    %20 = vector.load %arg5[%c0_4, %c0_5] : memref<8x128xf32, #tpu.memory_space<vmem>>, vector<8x128xf32>
    %cst_6 = arith.constant dense<0.000000e+00> : vector<8x128xf32>
    %21 = vector.multi_reduction <add>, %17, %cst_6 [0] : vector<1x8x128xf32> to vector<8x128xf32>
    %22 = arith.addf %20, %21 : vector<8x128xf32>
    %c0_7 = arith.constant 0 : index
    %c0_8 = arith.constant 0 : index
    %23 = vector.load %arg5[%c0_7, %c0_8] : memref<8x128xf32, #tpu.memory_space<vmem>>, vector<8x128xf32>
    tpu.vector_store %arg5[%c0_7, %c0_8], %22 {strides = array<i32>} : memref<8x128xf32, #tpu.memory_space<vmem>>, vector<8x128xf32>,
    %c0_9 = arith.constant 0 : index
    %c0_10 = arith.constant 0 : index
    %24 = vector.load %arg6[%c0_9, %c0_10] : memref<8x128xf32, #tpu.memory_space<vmem>>, vector<8x128xf32>
    %cst_11 = arith.constant dense<0.000000e+00> : vector<8x128xf32>
    %25 = vector.multi_reduction <add>, %19, %cst_11 [0] : vector<1x8x128xf32> to vector<8x128xf32>
    %26 = arith.addf %24, %25 : vector<8x128xf32>
    %c0_12 = arith.constant 0 : index
    %c0_13 = arith.constant 0 : index
    %27 = vector.load %arg6[%c0_12, %c0_13] : memref<8x128xf32, #tpu.memory_space<vmem>>, vector<8x128xf32>
    tpu.vector_store %arg6[%c0_12, %c0_13], %26 {strides = array<i32>} : memref<8x128xf32, #tpu.memory_space<vmem>>, vector<8x128xf32>,
    %c0_i32_14 = arith.constant 0 : i32
    %28 = arith.cmpi eq, %arg1, %c0_i32_14 : i32
    %29 = arith.extui %28 : i1 to i32
    %c0_i32_15 = arith.constant 0 : i32
    %30 = arith.cmpi ne, %29, %c0_i32_15 : i32
    scf.if %30 {
      %c0_16 = arith.constant 0 : index
      %c0_17 = arith.constant 0 : index
      %31 = vector.load %arg5[%c0_16, %c0_17] : memref<8x128xf32, #tpu.memory_space<vmem>>, vector<8x128xf32>
      %cst_18 = arith.constant 5.000000e-01 : f32
      %32 = vector.broadcast %cst_18 : f32 to vector<8x128xf32>
      %33 = arith.mulf %32, %31 : vector<8x128xf32>
      %c0_19 = arith.constant 0 : index
      %c0_20 = arith.constant 0 : index
      %34 = vector.load %arg6[%c0_19, %c0_20] : memref<8x128xf32, #tpu.memory_space<vmem>>, vector<8x128xf32>
      %cst_21 = arith.constant 5.000000e-01 : f32
      %35 = vector.broadcast %cst_21 : f32 to vector<8x128xf32>
      %36 = arith.mulf %35, %34 : vector<8x128xf32>
      %37 = arith.addf %33, %36 : vector<8x128xf32>
      %cst_22 = arith.constant 0.00141275243 : f32
      %38 = vector.broadcast %cst_22 : f32 to vector<8x128xf32>
      %39 = arith.mulf %37, %38 : vector<8x128xf32>
      %40 = vector.shape_cast %39 : vector<8x128xf32> to vector<1x8x128xf32>
      %c0_23 = arith.constant 0 : index
      %c0_24 = arith.constant 0 : index
      %c0_25 = arith.constant 0 : index
      %41 = vector.load %arg4[%c0_23, %c0_24, %c0_25] : memref<1x8x128xf32, #tpu.memory_space<vmem>>, vector<1x8x128xf32>
      tpu.vector_store %arg4[%c0_23, %c0_24, %c0_25], %40 {strides = array<i32>} : memref<1x8x128xf32, #tpu.memory_space<vmem>>, vector<1x8x128xf32>,
    } else {
    }
    return
  }
  func.func @transform_0(%arg0: i32, %arg1: i32) -> (i32, i32) {
    %c1_i32 = arith.constant 1 : i32
    %0 = arith.muli %arg0, %c1_i32 : i32
    %1 = arith.addi %0, %arg1 : i32
    %c0_i32 = arith.constant 0 : i32
    %2 = arith.minsi %1, %c0_i32 : i32
    %c0_i32_0 = arith.constant 0 : i32
    %c0_i32_1 = arith.constant 0 : i32
    return %2, %c0_i32_0 : i32, i32
  }
  func.func @transform_1(%arg0: i32, %arg1: i32) -> (i32, i32) {
    %c1_i32 = arith.constant 1 : i32
    %0 = arith.muli %arg0, %c1_i32 : i32
    %1 = arith.addi %0, %arg1 : i32
    %c0_i32 = arith.constant 0 : i32
    %2 = arith.minsi %1, %c0_i32 : i32
    %c0_i32_0 = arith.constant 0 : i32
    %c0_i32_1 = arith.constant 0 : i32
    return %2, %c0_i32_0 : i32, i32
  }
  func.func @transform_2(%arg0: i32, %arg1: i32) -> (i32, i32, i32) {
    %c0_i32 = arith.constant 0 : i32
    %c0_i32_0 = arith.constant 0 : i32
    %c0_i32_1 = arith.constant 0 : i32
    return %arg0, %c0_i32, %c0_i32_0 : i32, i32, i32
  }
}

</mosaic_0001>

<bundles_post_ra>
// kernel: combined_loss.1
= control target key start
LH: loop header
LB: loop body
LE: loop exit
PB: predicated region body
PF: predicated region fallthrough
CT: control target
= control target key end

     0   :  { %v106_v0 = vlaneseq  ;;  %s172_s0 = inlined_call_operand.vmem [shape: f32[4,128], index: 0, kind: input, shape index: {}]   ;;  %s173_s1 = inlined_call_operand.vmem [shape: f32[4,128], index: 1, kind: input, shape index: {}]   ;;  %s174_s2 = inlined_call_operand.vmem [shape: f32[1,8,128], index: 2, kind: output, shape index: {}]  }
   0x1   :  { %v101_v1 = vld [vmem:[%s172_s0] sm:$0xff] }
   0x2   :  { %v102_v2 = vld [vmem:[%s173_s1] sm:$0xff]  ;;  %v107_v4 = vshrl.u32 %v106_v0, 7 }
   0x3   :  { %v103_v3 = vsub.f32 %v101_v1, %v102_v2 }
   0x4   :  { %vm110_vm0 = vcmp.lt.s32.totalorder %v107_v4, 4 }
   0x5   :  { %v111_v5 = vsel %vm110_vm0, %v103_v3, 0.0 }
   0x6   :  { %v112_v6 = vmul.f32 %v111_v5, %v111_v5  ;;  %v113_v7 = vand.u32 2147483647, %v111_v5 }
   0x8   :  { %v126_v8 = vmul.f32 0.5, %v112_v6  ;;  %v128_v9 = vmul.f32 0.5, %v113_v7 }
   0xa   :  { %v129_v10 = vadd.f32 %v128_v9, %v126_v8 }
   0xc   :  { %v130_v11 = vmul.f32 0.0014127524, %v129_v10 }
   0xe   :  { %131 = vst [vmem:[%s174_s2] sm:$0xff] %v130_v11 }

</bundles_post_ra>
